<compile_context>
chip_gen: v7x
topology: tpu7x:2x2x1
jax: 0.10.0
libtpu: 0.0.40
codegen_flags: <defaults>
</compile_context>

<pallas_src>
import functools

import jax
import jax.numpy as jnp
from jax import lax
from jax.experimental import pallas as pl
from jax.experimental.pallas import tpu as pltpu

H_PAD = 128      # hidden width padded to one full lane group
SEG_ALIGN = 16   # bf16 packs 2 rows / sublane -> keep 16-row segment alignment
TB_CAP = 2048    # batch-tile cap (safe under v5e's 16 MiB default scoped VMEM)


def _round_up(x, m):
    return (x + m - 1) // m * m


# --------------------------------------------------------------------------
# parameter packing (done once at init time, not on the per-call path)
# --------------------------------------------------------------------------
def pack_params(params, state_dim, action_dim, hidden):
    """Pack (w1,b1,w2,b2,w3,b3) into one (rows, 128) bf16 slab.

    Row layout (segment starts are multiples of 16 rows so bf16 sublane
    packing keeps every in-kernel slice tile-aligned):
      [0         : rs        )  w1 rows for the state part   (pads = 0)
      [rs        : rs+ra     )  w1 rows for the action part
      [rs+ra     : rs+ra+128 )  w2 (hidden zero-padded to 128x128)
      [rs+ra+128 : +16       )  row 0: b1, row 1: b2, row 2: w3 (as a row),
                                row 3 lane 0: b3, rest zero
    """
    w1, b1, w2, b2, w3, b3 = params
    assert hidden <= H_PAD
    rs = _round_up(max(state_dim, 1), SEG_ALIGN)
    ra = _round_up(max(action_dim, 1), SEG_ALIGN)
    rows = rs + ra + H_PAD + SEG_ALIGN

    slab = jnp.zeros((rows, H_PAD), jnp.float32)
    slab = slab.at[0:state_dim, 0:hidden].set(w1[:state_dim])
    slab = slab.at[rs:rs + action_dim, 0:hidden].set(w1[state_dim:])
    o = rs + ra
    slab = slab.at[o:o + hidden, 0:hidden].set(w2)
    o = rs + ra + H_PAD
    slab = slab.at[o + 0, 0:hidden].set(b1)
    slab = slab.at[o + 1, 0:hidden].set(b2)
    slab = slab.at[o + 2, 0:hidden].set(w3.reshape(-1))
    slab = slab.at[o + 3, 0].set(b3.reshape(-1)[0])
    return slab.astype(jnp.bfloat16), dict(rs=rs, ra=ra)


# --------------------------------------------------------------------------
# kernel
# --------------------------------------------------------------------------
def critic_kernel(s_ref, a_ref, p_ref, q_ref, *, state_dim, action_dim, rs, ra):
    # bf16 operands for the MXU; all accumulation stays f32.
    s = s_ref[...].astype(jnp.bfloat16)                 # (TB, state_dim)
    a = a_ref[...].astype(jnp.bfloat16)                 # (TB, action_dim)

    # static, 16-row-aligned views into the resident bf16 parameter slab
    w1s = p_ref[0:state_dim, :]                         # (state_dim, 128) bf16
    w1a = p_ref[rs:rs + action_dim, :]                  # (action_dim, 128) bf16
    w2 = p_ref[rs + ra:rs + ra + H_PAD, :]              # (128, 128) bf16
    vo = rs + ra + H_PAD
    b1 = p_ref[vo + 0:vo + 1, :].astype(jnp.float32)    # (1, 128)
    b2 = p_ref[vo + 1:vo + 2, :].astype(jnp.float32)    # (1, 128)
    w3 = p_ref[vo + 2:vo + 3, :]                        # (1, 128) bf16
    b3 = p_ref[vo + 3:vo + 4, 0:1].astype(jnp.float32)  # (1, 1)

    # layer 1 -- fused concat: cat([s, a]) @ W1 == s @ W1[:S] + a @ W1[S:]
    h = jnp.dot(s, w1s, preferred_element_type=jnp.float32)
    h = h + jnp.dot(a, w1a, preferred_element_type=jnp.float32)
    h = jnp.maximum(h + b1, 0.0)                        # ReLU in f32 (VPU)

    # layer 2
    h = jnp.dot(h.astype(jnp.bfloat16), w2, preferred_element_type=jnp.float32)
    h = jnp.maximum(h + b2, 0.0)                        # ReLU in f32 (VPU)

    # layer 3 -- lane-dense (1, TB) row: w3 (1,128) contracted with h (TB,128)
    q = lax.dot_general(w3, h.astype(jnp.bfloat16),
                        dimension_numbers=(((1,), (1,)), ((), ())),
                        preferred_element_type=jnp.float32)   # (1, TB)
    q = q + b3                                          # broadcast (1,1)
    q_ref[...] = q.reshape(q_ref.shape).astype(q_ref.dtype)


# --------------------------------------------------------------------------
# wrapper
# --------------------------------------------------------------------------
def critic_forward(s, a, packed, layout, state_dim, action_dim):
    """s: (B, state_dim) f32, a: (B, action_dim) f32 -> q: (B, 1) f32."""
    B = s.shape[0]

    # Batch tile = output lane width. Sized so the grid has >= 2 steps when
    # B > 8 (shards across both v7x TensorCores) and capped at TB_CAP.
    align = 128 if B >= 256 else 8
    TB = max(align, min(TB_CAP, _round_up(pl.cdiv(B, 2), align)))
    grid_n = pl.cdiv(B, TB)
    Bp = grid_n * TB

    if Bp != B:   # zero-pad so every block is exact; pad rows sliced off below
        s = jnp.pad(s, ((0, Bp - B), (0, 0)))
        a = jnp.pad(a, ((0, Bp - B), (0, 0)))

    rows = packed.shape[0]
    kernel = functools.partial(
        critic_kernel, state_dim=state_dim, action_dim=action_dim,
        rs=layout["rs"], ra=layout["ra"])

    flops = 2 * Bp * ((state_dim + action_dim) * H_PAD + H_PAD * H_PAD + H_PAD)
    bytes_accessed = s.size * 4 + a.size * 4 + packed.size * 2 + Bp * 4

    def call(single_buffer_slab):
        slab_kwargs = ({"pipeline_mode": pl.Buffered(1)}
                       if single_buffer_slab else {})
        return pl.pallas_call(
            kernel,
            out_shape=jax.ShapeDtypeStruct((grid_n, 1, TB), jnp.float32),
            grid=(grid_n,),
            in_specs=[
                pl.BlockSpec((TB, state_dim), lambda i: (i, 0)),
                pl.BlockSpec((TB, action_dim), lambda i: (i, 0)),
                # constant index_map -> weight slab stays resident in VMEM
                pl.BlockSpec((rows, H_PAD), lambda i: (0, 0), **slab_kwargs),
            ],
            out_specs=pl.BlockSpec((1, 1, TB), lambda i: (i, 0, 0)),
            compiler_params=pltpu.CompilerParams(
                dimension_semantics=("parallel",)),
            cost_estimate=pl.CostEstimate(
                flops=flops, transcendentals=0, bytes_accessed=bytes_accessed),
        )(s, a, packed)

    try:
        q = call(True)      # single resident buffer for the constant slab
    except Exception:       # installed JAX rejects Buffered(1) -> default spec
        q = call(False)

    return q.reshape(-1)[:B].reshape(B, 1)


# --------------------------------------------------------------------------
# init mimicking nn.Linear default (U(-1/sqrt(fan_in), +1/sqrt(fan_in)))
# weights stored as (in_features, out_features) so forward is x @ W + b
# --------------------------------------------------------------------------
def init_params(key, state_dim, action_dim, hidden_width):
    in_dim = state_dim + action_dim

    def linear(key, fan_in, fan_out):
        kw, kb = jax.random.split(key)
        bound = 1.0 / jnp.sqrt(jnp.float32(fan_in))
        w = jax.random.uniform(kw, (fan_in, fan_out), jnp.float32, -bound, bound)
        b = jax.random.uniform(kb, (fan_out,), jnp.float32, -bound, bound)
        return w, b

    k1, k2, k3 = jax.random.split(key, 3)
    w1, b1 = linear(k1, in_dim, hidden_width)
    w2, b2 = linear(k2, hidden_width, hidden_width)
    w3, b3 = linear(k3, hidden_width, 1)
    return (w1, b1, w2, b2, w3, b3)


if __name__ == "__main__":
    state_dim, action_dim, hidden_width = 12, 4, 32
    batch = 2

    key = jax.random.PRNGKey(0)
    kp, ks, ka = jax.random.split(key, 3)
    params = init_params(kp, state_dim, action_dim, hidden_width)
    packed, layout = pack_params(params, state_dim, action_dim, hidden_width)

    s = jax.random.normal(ks, (batch, state_dim), jnp.float32)
    a = jax.random.normal(ka, (batch, action_dim), jnp.float32)

    q = critic_forward(s, a, packed, layout, state_dim, action_dim)
    q = jax.block_until_ready(q)

    # plain-JAX f32 reference (kernel uses bf16 MXU operands -> loose tol)
    w1, b1, w2, b2, w3, b3 = params
    x = jnp.concatenate([s, a], axis=1)
    h = jnp.maximum(x @ w1 + b1, 0.0)
    h = jnp.maximum(h @ w2 + b2, 0.0)
    q_ref = h @ w3 + b3

    assert q.shape == (batch, 1)
    assert jnp.allclose(q, q_ref, atol=3e-2, rtol=3e-2)

    print("KERNEL_OK")
</pallas_src>

<mosaic_0001>
module attributes {stable_mosaic.version = 11 : i64} {
  func.func @critic_kernel(%arg0: i32, %arg1: memref<8x12xf32, #tpu.memory_space<vmem>>, %arg2: memref<8x4xf32, #tpu.memory_space<vmem>>, %arg3: memref<176x128xbf16, #tpu.memory_space<vmem>>, %arg4: memref<1x1x8xf32, #tpu.memory_space<vmem>>) attributes {dimension_semantics = [#tpu.dimension_semantics<parallel>], iteration_bounds = array<i64: 1>, scalar_prefetch = 0 : i64, scratch_operands = 0 : i64, tpu.core_type = #tpu.core_type<tc>, window_params = [{transform_indices = @transform_0, window_bounds = array<i64: 8, 12>}, {transform_indices = @transform_1, window_bounds = array<i64: 8, 4>}, {pipeline_mode = #tpu.pipeline_mode<synchronous>, transform_indices = @transform_2, window_bounds = array<i64: 176, 128>}, {transform_indices = @transform_3, window_bounds = array<i64: 1, 1, 8>}]} {
    %c0 = arith.constant 0 : index
    %c0_0 = arith.constant 0 : index
    %0 = vector.load %arg1[%c0, %c0_0] : memref<8x12xf32, #tpu.memory_space<vmem>>, vector<8x12xf32>
    %1 = arith.truncf %0 : vector<8x12xf32> to vector<8x12xbf16>
    %c0_1 = arith.constant 0 : index
    %c0_2 = arith.constant 0 : index
    %2 = vector.load %arg2[%c0_1, %c0_2] : memref<8x4xf32, #tpu.memory_space<vmem>>, vector<8x4xf32>
    %3 = arith.truncf %2 : vector<8x4xf32> to vector<8x4xbf16>
    %c0_3 = arith.constant 0 : index
    %c0_4 = arith.constant 0 : index
    %4 = vector.load %arg3[%c0_3, %c0_4] : memref<176x128xbf16, #tpu.memory_space<vmem>>, vector<12x128xbf16>
    %c16 = arith.constant 16 : index
    %c0_5 = arith.constant 0 : index
    %5 = vector.load %arg3[%c16, %c0_5] : memref<176x128xbf16, #tpu.memory_space<vmem>>, vector<4x128xbf16>
    %c32 = arith.constant 32 : index
    %c0_6 = arith.constant 0 : index
    %6 = vector.load %arg3[%c32, %c0_6] : memref<176x128xbf16, #tpu.memory_space<vmem>>, vector<128x128xbf16>
    %c160 = arith.constant 160 : index
    %c0_7 = arith.constant 0 : index
    %7 = vector.load %arg3[%c160, %c0_7] : memref<176x128xbf16, #tpu.memory_space<vmem>>, vector<1x128xbf16>
    %8 = arith.extf %7 : vector<1x128xbf16> to vector<1x128xf32>
    %c161 = arith.constant 161 : index
    %c0_8 = arith.constant 0 : index
    %9 = vector.load %arg3[%c161, %c0_8] : memref<176x128xbf16, #tpu.memory_space<vmem>>, vector<1x128xbf16>
    %10 = arith.extf %9 : vector<1x128xbf16> to vector<1x128xf32>
    %c162 = arith.constant 162 : index
    %c0_9 = arith.constant 0 : index
    %11 = vector.load %arg3[%c162, %c0_9] : memref<176x128xbf16, #tpu.memory_space<vmem>>, vector<1x128xbf16>
    %c163 = arith.constant 163 : index
    %c0_10 = arith.constant 0 : index
    %12 = vector.load %arg3[%c163, %c0_10] : memref<176x128xbf16, #tpu.memory_space<vmem>>, vector<1x1xbf16>
    %13 = arith.extf %12 : vector<1x1xbf16> to vector<1x1xf32>
    %cst = arith.constant dense<0.000000e+00> : vector<8x128xf32>
    %14 = tpu.matmul %1, %4, %cst {dimension_numbers = #tpu.dot_dimension_numbers<[1], [0], [0], [1], [0, 0, 1, 1], [], []>} : vector<8x12xbf16>, vector<12x128xbf16>, vector<8x128xf32> -> vector<8x128xf32>
    %cst_11 = arith.constant dense<0.000000e+00> : vector<8x128xf32>
    %15 = tpu.matmul %3, %5, %cst_11 {dimension_numbers = #tpu.dot_dimension_numbers<[1], [0], [0], [1], [0, 0, 1, 1], [], []>} : vector<8x4xbf16>, vector<4x128xbf16>, vector<8x128xf32> -> vector<8x128xf32>
    %16 = arith.addf %14, %15 : vector<8x128xf32>
    %17 = vector.broadcast %8 : vector<1x128xf32> to vector<8x128xf32>
    %18 = arith.addf %16, %17 : vector<8x128xf32>
    %cst_12 = arith.constant 0.000000e+00 : f32
    %19 = vector.broadcast %cst_12 : f32 to vector<8x128xf32>
    %20 = arith.maximumf %18, %19 : vector<8x128xf32>
    %21 = arith.truncf %20 : vector<8x128xf32> to vector<8x128xbf16>
    %cst_13 = arith.constant dense<0.000000e+00> : vector<8x128xf32>
    %22 = tpu.matmul %21, %6, %cst_13 {dimension_numbers = #tpu.dot_dimension_numbers<[1], [0], [0], [1], [0, 0, 1, 1], [], []>} : vector<8x128xbf16>, vector<128x128xbf16>, vector<8x128xf32> -> vector<8x128xf32>
    %23 = vector.broadcast %10 : vector<1x128xf32> to vector<8x128xf32>
    %24 = arith.addf %22, %23 : vector<8x128xf32>
    %cst_14 = arith.constant 0.000000e+00 : f32
    %25 = vector.broadcast %cst_14 : f32 to vector<8x128xf32>
    %26 = arith.maximumf %24, %25 : vector<8x128xf32>
    %27 = arith.truncf %26 : vector<8x128xf32> to vector<8x128xbf16>
    %cst_15 = arith.constant dense<0.000000e+00> : vector<1x8xf32>
    %28 = tpu.matmul %11, %27, %cst_15 {dimension_numbers = #tpu.dot_dimension_numbers<[1], [1], [0], [0], [0, 0, 1, 0], [], []>} : vector<1x128xbf16>, vector<8x128xbf16>, vector<1x8xf32> -> vector<1x8xf32>
    %29 = vector.broadcast %13 : vector<1x1xf32> to vector<1x8xf32>
    %30 = arith.addf %28, %29 : vector<1x8xf32>
    %31 = vector.shape_cast %30 : vector<1x8xf32> to vector<1x1x8xf32>
    %c0_16 = arith.constant 0 : index
    %c0_17 = arith.constant 0 : index
    %c0_18 = arith.constant 0 : index
    %32 = vector.load %arg4[%c0_16, %c0_17, %c0_18] : memref<1x1x8xf32, #tpu.memory_space<vmem>>, vector<1x1x8xf32>
    tpu.vector_store %arg4[%c0_16, %c0_17, %c0_18], %31 {strides = array<i32>} : memref<1x1x8xf32, #tpu.memory_space<vmem>>, vector<1x1x8xf32>,
    return
  }
  func.func @transform_0(%arg0: i32) -> (i32, i32) {
    %c0_i32 = arith.constant 0 : i32
    %c0_i32_0 = arith.constant 0 : i32
    return %arg0, %c0_i32 : i32, i32
  }
  func.func @transform_1(%arg0: i32) -> (i32, i32) {
    %c0_i32 = arith.constant 0 : i32
    %c0_i32_0 = arith.constant 0 : i32
    return %arg0, %c0_i32 : i32, i32
  }
  func.func @transform_2(%arg0: i32) -> (i32, i32) {
    %c0_i32 = arith.constant 0 : i32
    %c0_i32_0 = arith.constant 0 : i32
    %c0_i32_1 = arith.constant 0 : i32
    return %c0_i32, %c0_i32_0 : i32, i32
  }
  func.func @transform_3(%arg0: i32) -> (i32, i32, i32) {
    %c0_i32 = arith.constant 0 : i32
    %c0_i32_0 = arith.constant 0 : i32
    %c0_i32_1 = arith.constant 0 : i32
    return %arg0, %c0_i32, %c0_i32_0 : i32, i32, i32
  }
}

module attributes {stable_mosaic.version = 11 : i64} {
  func.func @critic_kernel(%arg0: i32, %arg1: memref<8x12xf32, #tpu.memory_space<vmem>>, %arg2: memref<8x4xf32, #tpu.memory_space<vmem>>, %arg3: memref<176x128xbf16, #tpu.memory_space<vmem>>, %arg4: memref<1x1x8xf32, #tpu.memory_space<vmem>>) attributes {dimension_semantics = [#tpu.dimension_semantics<parallel>], iteration_bounds = array<i64: 1>, scalar_prefetch = 0 : i64, scratch_operands = 0 : i64, tpu.core_type = #tpu.core_type<tc>, window_params = [{transform_indices = @transform_0, window_bounds = array<i64: 8, 12>}, {transform_indices = @transform_1, window_bounds = array<i64: 8, 4>}, {pipeline_mode = #tpu.pipeline_mode<synchronous>, transform_indices = @transform_2, window_bounds = array<i64: 176, 128>}, {transform_indices = @transform_3, window_bounds = array<i64: 1, 1, 8>}]} {
    %c0 = arith.constant 0 : index
    %c0_0 = arith.constant 0 : index
    %0 = vector.load %arg1[%c0, %c0_0] : memref<8x12xf32, #tpu.memory_space<vmem>>, vector<8x12xf32>
    %1 = arith.truncf %0 : vector<8x12xf32> to vector<8x12xbf16>
    %c0_1 = arith.constant 0 : index
    %c0_2 = arith.constant 0 : index
    %2 = vector.load %arg2[%c0_1, %c0_2] : memref<8x4xf32, #tpu.memory_space<vmem>>, vector<8x4xf32>
    %3 = arith.truncf %2 : vector<8x4xf32> to vector<8x4xbf16>
    %c0_3 = arith.constant 0 : index
    %c0_4 = arith.constant 0 : index
    %4 = vector.load %arg3[%c0_3, %c0_4] : memref<176x128xbf16, #tpu.memory_space<vmem>>, vector<12x128xbf16>
    %c16 = arith.constant 16 : index
    %c0_5 = arith.constant 0 : index
    %5 = vector.load %arg3[%c16, %c0_5] : memref<176x128xbf16, #tpu.memory_space<vmem>>, vector<4x128xbf16>
    %c32 = arith.constant 32 : index
    %c0_6 = arith.constant 0 : index
    %6 = vector.load %arg3[%c32, %c0_6] : memref<176x128xbf16, #tpu.memory_space<vmem>>, vector<128x128xbf16>
    %c160 = arith.constant 160 : index
    %c0_7 = arith.constant 0 : index
    %7 = vector.load %arg3[%c160, %c0_7] : memref<176x128xbf16, #tpu.memory_space<vmem>>, vector<1x128xbf16>
    %8 = arith.extf %7 : vector<1x128xbf16> to vector<1x128xf32>
    %c161 = arith.constant 161 : index
    %c0_8 = arith.constant 0 : index
    %9 = vector.load %arg3[%c161, %c0_8] : memref<176x128xbf16, #tpu.memory_space<vmem>>, vector<1x128xbf16>
    %10 = arith.extf %9 : vector<1x128xbf16> to vector<1x128xf32>
    %c162 = arith.constant 162 : index
    %c0_9 = arith.constant 0 : index
    %11 = vector.load %arg3[%c162, %c0_9] : memref<176x128xbf16, #tpu.memory_space<vmem>>, vector<1x128xbf16>
    %c163 = arith.constant 163 : index
    %c0_10 = arith.constant 0 : index
    %12 = vector.load %arg3[%c163, %c0_10] : memref<176x128xbf16, #tpu.memory_space<vmem>>, vector<1x1xbf16>
    %13 = arith.extf %12 : vector<1x1xbf16> to vector<1x1xf32>
    %cst = arith.constant dense<0.000000e+00> : vector<8x128xf32>
    %14 = tpu.matmul %1, %4, %cst {dimension_numbers = #tpu.dot_dimension_numbers<[1], [0], [0], [1], [0, 0, 1, 1], [], []>} : vector<8x12xbf16>, vector<12x128xbf16>, vector<8x128xf32> -> vector<8x128xf32>
    %cst_11 = arith.constant dense<0.000000e+00> : vector<8x128xf32>
    %15 = tpu.matmul %3, %5, %cst_11 {dimension_numbers = #tpu.dot_dimension_numbers<[1], [0], [0], [1], [0, 0, 1, 1], [], []>} : vector<8x4xbf16>, vector<4x128xbf16>, vector<8x128xf32> -> vector<8x128xf32>
    %16 = arith.addf %14, %15 : vector<8x128xf32>
    %17 = vector.broadcast %8 : vector<1x128xf32> to vector<8x128xf32>
    %18 = arith.addf %16, %17 : vector<8x128xf32>
    %cst_12 = arith.constant 0.000000e+00 : f32
    %19 = vector.broadcast %cst_12 : f32 to vector<8x128xf32>
    %20 = arith.maximumf %18, %19 : vector<8x128xf32>
    %21 = arith.truncf %20 : vector<8x128xf32> to vector<8x128xbf16>
    %cst_13 = arith.constant dense<0.000000e+00> : vector<8x128xf32>
    %22 = tpu.matmul %21, %6, %cst_13 {dimension_numbers = #tpu.dot_dimension_numbers<[1], [0], [0], [1], [0, 0, 1, 1], [], []>} : vector<8x128xbf16>, vector<128x128xbf16>, vector<8x128xf32> -> vector<8x128xf32>
    %23 = vector.broadcast %10 : vector<1x128xf32> to vector<8x128xf32>
    %24 = arith.addf %22, %23 : vector<8x128xf32>
    %cst_14 = arith.constant 0.000000e+00 : f32
    %25 = vector.broadcast %cst_14 : f32 to vector<8x128xf32>
    %26 = arith.maximumf %24, %25 : vector<8x128xf32>
    %27 = arith.truncf %26 : vector<8x128xf32> to vector<8x128xbf16>
    %cst_15 = arith.constant dense<0.000000e+00> : vector<1x8xf32>
    %28 = tpu.matmul %11, %27, %cst_15 {dimension_numbers = #tpu.dot_dimension_numbers<[1], [1], [0], [0], [0, 0, 1, 0], [], []>} : vector<1x128xbf16>, vector<8x128xbf16>, vector<1x8xf32> -> vector<1x8xf32>
    %29 = vector.broadcast %13 : vector<1x1xf32> to vector<1x8xf32>
    %30 = arith.addf %28, %29 : vector<1x8xf32>
    %31 = vector.shape_cast %30 : vector<1x8xf32> to vector<1x1x8xf32>
    %c0_16 = arith.constant 0 : index
    %c0_17 = arith.constant 0 : index
    %c0_18 = arith.constant 0 : index
    %32 = vector.load %arg4[%c0_16, %c0_17, %c0_18] : memref<1x1x8xf32, #tpu.memory_space<vmem>>, vector<1x1x8xf32>
    tpu.vector_store %arg4[%c0_16, %c0_17, %c0_18], %31 {strides = array<i32>} : memref<1x1x8xf32, #tpu.memory_space<vmem>>, vector<1x1x8xf32>,
    return
  }
  func.func @transform_0(%arg0: i32) -> (i32, i32) {
    %c0_i32 = arith.constant 0 : i32
    %c0_i32_0 = arith.constant 0 : i32
    return %arg0, %c0_i32 : i32, i32
  }
  func.func @transform_1(%arg0: i32) -> (i32, i32) {
    %c0_i32 = arith.constant 0 : i32
    %c0_i32_0 = arith.constant 0 : i32
    return %arg0, %c0_i32 : i32, i32
  }
  func.func @transform_2(%arg0: i32) -> (i32, i32) {
    %c0_i32 = arith.constant 0 : i32
    %c0_i32_0 = arith.constant 0 : i32
    %c0_i32_1 = arith.constant 0 : i32
    return %c0_i32, %c0_i32_0 : i32, i32
  }
  func.func @transform_3(%arg0: i32) -> (i32, i32, i32) {
    %c0_i32 = arith.constant 0 : i32
    %c0_i32_0 = arith.constant 0 : i32
    %c0_i32_1 = arith.constant 0 : i32
    return %arg0, %c0_i32, %c0_i32_0 : i32, i32, i32
  }
}

</mosaic_0001>

<bundles_post_ra>
// kernel: tpu_custom_call.1
= control target key start
LH: loop header
LB: loop body
LE: loop exit
PB: predicated region body
PF: predicated region fallthrough
CT: control target
= control target key end

     0   :  { %8 = vsyncpa [#allocation3], 0  ;;  %s519_s0 = inlined_call_operand.vmem [shape: f32[8,12], index: 0, kind: input, shape index: {}]   ;;  %s520_s1 = inlined_call_operand.vmem [shape: f32[8,4], index: 1, kind: input, shape index: {}]   ;;  %s521_s2 = inlined_call_operand.hbm [shape: bf16[176,128], index: 2, kind: input, shape index: {}]   ;;  %s522_s3 = inlined_call_operand.hbm [shape: f32[1,1,8], index: 3, kind: output, shape index: {}]  }
   0x1   :  { %9 = vsyncpa [#allocation4], 0  ;;  %s458_s12 = smov [#allocation2]   ;;  %s410_s16 = scalar_lea.hbm %s521_s2, 1408 }
   0x2   :  { %s19_s13 = sshll.u32 %s458_s12, 4  ;;  %p411_p0 = scmp.ne.s32.totalorder %s521_s2, %s410_s16  ;;  %s20_s13 = int_to_ptr.vmem [resolvable:$true] %s19_s13 }
   0x3   :  { %p414_p1 = scmp.lt.u32.totalorder %s410_s16, %s521_s2 }
   0x5   :  { %p416_p2 = pnand %p414_p1, %p411_p0 }
   0x7   :  { %419 = shalt.err (!%p416_p2)
}
   0x8   :  { %s420_s21 = scalar_lea.vmem %s20_s13, 1408  ;;  %p425_p4 = scmp.lt.s32.totalorder %s20_s13, %s20_s13 }
   0x9   :  { %p421_p3 = scmp.ne.s32.totalorder %s20_s13, %s420_s21  ;;  %p426_p5 = scmp.lt.s32.totalorder %s420_s21, %s420_s21 }
   0xb   :  { %p427_p6 = por %p426_p5, %p425_p4 }
   0xd   :  { %p428_p7 = pnand %p427_p6, %p421_p3 }
   0xf   :  { %431 = shalt.err (!%p428_p7)
}
  0x10   :  { %s459_s22 = smov 64   ;;  %s460_s23 = smov 4  }
  0x11   :  { %25 = dma.hbm_to_vmem [thread:$0]  %s521_s2, 1408, %s20_s13, [#allocation3], %s459_s22, %s459_s22, %s460_s23  }
  0x12   :  { %454 = dma.done.wait [#allocation3], 1408  }
  0x13   :  { %455 = vsyncadd [#allocation3], 4294965888  ;;  %v461_v0 = vmov 0.0   ;;  %vm462_vm0 = vmmov 0   ;;  %vm61_vm1 = vcmask 1041408   ;;  %v32_v2 = vld [vmem:[%s520_s1] sm:$0xff]  ;;  %v158_v16 = vlaneseq }
  0x14   :  { %354 = vmatprep.subr.bf16.mxu1 %v461_v0  ;;  %356 = vmatprep.mubr.msk.bf16.mxu1 %vm462_vm0, %v461_v0  ;;  %v36_v1 = vld [vmem:[#allocation2 + $0x8] sm:$0x3]  ;;  %vm114_vm2 = vcmask 1045504   ;;  %v33_v4 = vpack.c.bf16 %v32_v2, %v32_v2  ;;  %v400_v5 = vld [vmem:[#allocation2] sm:$0x3f]   ;;  %vm57_vm3 = vcmask 31744  }
  0x15   :  { %366 = vmatprep.subr.bf16.mxu0 %v461_v0  ;;  %382 = vmatprep.mubr.msk.bf16.mxu0 %vm462_vm0, %v461_v0  ;;  %v63_v3 = vsel %vm61_vm1, %v36_v1, 0  ;;  %v401_v6 = vld [vmem:[#allocation2 + $0x10] sm:$0xff]   ;;  %v116_v7 = vsel %vm114_vm2, %v400_v5, 0  ;;  %v402_v8 = vld [vmem:[#allocation2 + $0x18] sm:$0xff]   ;;  %v30_v9 = vld [vmem:[%s519_s0] sm:$0xff]  ;;  %vm110_vm4 = vcmask 97280  }
  0x16   :  { %355 = vmatpush3.bf16.msra.mxu1 %v63_v3  ;;  %367 = vmatpush3.bf16.msra.mxu0 %v401_v6  ;;  %v403_v10 = vld [vmem:[#allocation2 + $0x20] sm:$0xff]   ;;  %v31_v11 = vpack.c.bf16 %v30_v9, %v30_v9  ;;  %v404_v12 = vld [vmem:[#allocation2 + $0x28] sm:$0xff]   ;;  %v405_v13 = vld [vmem:[#allocation2 + $0x30] sm:$0xff]   ;;  %v159_v19 = vshrl.u32 %v158_v16, 7  ;;  %v463_v39 = vmov 0   ;;  %s464_s0 = smov [#allocation5]  }
  0x17   :  { %360 = vmatprep.subr.bf16.mxu1 %v461_v0  ;;  %368 = vmatprep.subr.bf16.mxu0 %v461_v0  ;;  %v406_v14 = vld [vmem:[#allocation2 + $0x38] sm:$0xff]   ;;  %v407_v15 = vld [vmem:[#allocation2 + $0x40] sm:$0xff]   ;;  %v408_v17 = vld [vmem:[#allocation2 + $0x48] sm:$0xff]   ;;  %s318_s1 = sshll.u32 %s464_s0, 4  ;;  %vm310_vm5 = vcmask 57344   ;;  %s319_s1 = int_to_ptr.vmem [resolvable:$true] %s318_s1 }
  0x18   :  { %v53_v18 = vld [vmem:[#allocation2 + $0x50] sm:$0x1]  ;;  %v167_v21 = vsub.s32 1, %v159_v19  ;;  %v160_v27 = vsub.s32 0, %v159_v19  ;;  %v55_v37 = vld [vmem:[#allocation2 + $0x50] sm:$0x2]  ;;  %399 = vset.pattern.permute.xlu0 %v463_v39  ;;  %p437_p9 = scmp.lt.s32.totalorder %s319_s1, %s319_s1 }
  0x19   :  { %357 = vmatmul.mubr.msk.bf16.vlgmr.msra.gmra.mrb[0].mxu1 %vm57_vm3, %v33_v4  ;;  %v54_v20 = vunpack.c.l.bf16 %v53_v18  ;;  %v56_v38 = vunpack.c.l.bf16 %v55_v37  ;;  %v338_v47 = vcombine.low %v55_v37, %v55_v37  ;;  %s432_s29 = scalar_lea.vmem %s319_s1, 16  ;;  %s436_s30 = scalar_lea.vmem %s319_s1, 32 }
  0x1a   :  { %361 = vmatpush3.bf16.msra.mxu1 %v116_v7  ;;  %362 = vmatprep.mubr.msk.bf16.mxu1 %vm462_vm0, %v461_v0  ;;  %p433_p8 = scmp.ne.s32.totalorder %s319_s1, %s432_s29  ;;  %p438_p10 = scmp.lt.s32.totalorder %s436_s30, %s432_s29 }
  0x1b   :  { %386 = vmatprep.subr.bf16.mxu1 %v461_v0  ;;  %369 = vmatpush3.bf16.msra.mxu0 %v402_v8  ;;  %v168_v22 = vrot.slane %v54_v20, %v167_v21  ;;  %v161_v28 = vrot.slane %v54_v20, %v160_v27  ;;  %v266_v48 = vrot.slane %v338_v47, 1 }
  0x1c   :  { %370 = vmatprep.subr.bf16.mxu0 %v461_v0  ;;  %261 = vperm.xlu0 %399, %v56_v38   ;;  %p439_p11 = por %p438_p10, %p437_p9 }
  0x1e   :  { %p440_p12 = pnand %p439_p11, %p433_p8 }
  0x1f   :  { %371 = vmatpush3.bf16.msra.mxu0 %v403_v10 }
  0x20   :  { %372 = vmatprep.subr.bf16.mxu0 %v461_v0 }
  0x21   :  { %363 = vmatmul.mubr.msk.bf16.vlgmr.msra.gmra.mrb[4].mxu1 %vm110_vm4, %v31_v11 }
  0x22   :  { %388 = vmatprep.mubr.msk.bf16.mxu1 %vm462_vm0, %v461_v0 }
  0x23   :  { %373 = vmatpush3.bf16.msra.mxu0 %v404_v12 }
  0x24   :  { %374 = vmatprep.subr.bf16.mxu0 %v461_v0 }
  0x27   :  { %375 = vmatpush3.bf16.msra.mxu0 %v405_v13 }
  0x28   :  { %376 = vmatprep.subr.bf16.mxu0 %v461_v0 }
  0x2b   :  { %377 = vmatpush3.bf16.msra.mxu0 %v406_v14 }
  0x2c   :  { %378 = vmatprep.subr.bf16.mxu0 %v461_v0 }
  0x2f   :  { %379 = vmatpush3.bf16.msra.mxu0 %v407_v15 }
  0x30   :  { %380 = vmatprep.subr.bf16.mxu0 %v461_v0 }
  0x33   :  { %381 = vmatpush3.bf16.msra.mxu0 %v408_v17 }
  0x9b   :  { %v262_v49 = vpop.permute.xlu0 %261 }
  0x9c   :  { %v268_v50 = vrot.slane %v262_v49, 3 }
  0xec   :  { %v99_v23 = vpop.f32.mrb[0].mxu1 }
  0xed   :  { %v358_v24 = vpop.f32.mrb[1].mxu1 }
  0xee   :  { %v102_v25 = vpop.f32.mrb[2].mxu1 }
  0xef   :  { %v359_v26 = vpop.f32.mrb[3].mxu1 }
  0xf4   :  { %v152_v29 = vpop.f32.mrb[4].mxu1 }
  0xf5   :  { %v153_v30 = vadd.f32 %v152_v29, %v99_v23  ;;  %v364_v31 = vpop.f32.mrb[5].mxu1 }
  0xf6   :  { %v155_v32 = vpop.f32.mrb[6].mxu1 }
  0xf7   :  { %v162_v33 = vadd.f32 %v161_v28, %v153_v30  ;;  %v365_v34 = vpop.f32.mrb[7].mxu1 }
  0xf9   :  { %v163_v35 = vmax.f32 %v162_v33, 0.0 }
  0xfb   :  { %v164_v36 = vpack.c.bf16 %v163_v35, %v163_v35 }
  0xfd   :  { %383 = vmatmul.mubr.bf16.vlgmr.msra.gmra.mrb[0].mxu0 %v164_v36 }
 0x1d0   :  { %v251_v40 = vpop.f32.mrb[0].mxu0 }
 0x1d1   :  { %v252_v41 = vadd.f32 %v251_v40, %v168_v22  ;;  %v384_v42 = vpop.f32.mrb[1].mxu0 }
 0x1d2   :  { %v254_v43 = vpop.f32.mrb[2].mxu0 }
 0x1d3   :  { %v257_v44 = vmax.f32 %v252_v41, 0.0  ;;  %v385_v45 = vpop.f32.mrb[3].mxu0 }
 0x1d5   :  { %v258_v46 = vpack.c.bf16 %v257_v44, %v257_v44 }
 0x1d7   :  { %387 = vmatpush3.bf16.xpose.msra.mxu1 %v258_v46 }
 0x1de   :  { %389 = vmatmul.mubr.bf16.vlgmr.msra.gmra.mrb[8].mxu1 %v266_v48 }
 0x2b1   :  { %v304_v51 = vpop.f32.mrb[8].mxu1 }
 0x2b2   :  { %v305_v52 = vadd.f32 %v304_v51, %v268_v50  ;;  %v390_v53 = vpop.f32.mrb[9].mxu1 }
 0x2b3   :  { %v307_v54 = vpop.f32.mrb[10].mxu1 }
 0x2b4   :  { %v391_v55 = vpop.f32.mrb[11].mxu1  ;;  %311 = vst.msk [vmem:[#allocation5] sm:$0x1] %vm310_vm5, %v305_v52 }
 0x2b5   :  { %443 = shalt.err (!%p440_p12)
}
 0x2b6   :  { %s444_s6 = scalar_lea.hbm %s522_s3, 16 }
 0x2b7   :  { %p445_p13 = scmp.ne.s32.totalorder %s522_s3, %s444_s6  ;;  %p448_p0 = scmp.lt.u32.totalorder %s444_s6, %s522_s3 }
 0x2b9   :  { %p450_p1 = pnand %p448_p0, %p445_p13 }
 0x2bb   :  { %453 = shalt.err (!%p450_p1)
}
 0x2bc   :  { %321 = dma.vmem_to_hbm [thread:$0]  %s319_s1, 16, %s522_s3, [#allocation4]  }
 0x2bd   :  { %456 = dma.done.wait [#allocation4], 16  }
 0x2be   :  { %457 = vsyncadd [#allocation4], 4294967280 }
 0x2bf   :  { %325 = vsyncpa [#allocation3], 1 }
 0x2c0   :  { %326 = vsyncpa [#allocation4], 1 }

// kernel: tpu_custom_call.1
= control target key start
LH: loop header
LB: loop body
LE: loop exit
PB: predicated region body
PF: predicated region fallthrough
CT: control target
= control target key end

     0   :  { %8 = vsyncpa [#allocation3], 0  ;;  %s519_s0 = inlined_call_operand.vmem [shape: f32[8,12], index: 0, kind: input, shape index: {}]   ;;  %s520_s1 = inlined_call_operand.vmem [shape: f32[8,4], index: 1, kind: input, shape index: {}]   ;;  %s521_s2 = inlined_call_operand.hbm [shape: bf16[176,128], index: 2, kind: input, shape index: {}]   ;;  %s522_s3 = inlined_call_operand.hbm [shape: f32[1,1,8], index: 3, kind: output, shape index: {}]  }
   0x1   :  { %9 = vsyncpa [#allocation4], 0  ;;  %s458_s12 = smov [#allocation2]   ;;  %s410_s16 = scalar_lea.hbm %s521_s2, 1408 }
   0x2   :  { %s19_s13 = sshll.u32 %s458_s12, 4  ;;  %p411_p0 = scmp.ne.s32.totalorder %s521_s2, %s410_s16  ;;  %s20_s13 = int_to_ptr.vmem [resolvable:$true] %s19_s13 }
   0x3   :  { %p414_p1 = scmp.lt.u32.totalorder %s410_s16, %s521_s2 }
   0x5   :  { %p416_p2 = pnand %p414_p1, %p411_p0 }
   0x7   :  { %419 = shalt.err (!%p416_p2)
}
   0x8   :  { %s420_s21 = scalar_lea.vmem %s20_s13, 1408  ;;  %p425_p4 = scmp.lt.s32.totalorder %s20_s13, %s20_s13 }
   0x9   :  { %p421_p3 = scmp.ne.s32.totalorder %s20_s13, %s420_s21  ;;  %p426_p5 = scmp.lt.s32.totalorder %s420_s21, %s420_s21 }
   0xb   :  { %p427_p6 = por %p426_p5, %p425_p4 }
   0xd   :  { %p428_p7 = pnand %p427_p6, %p421_p3 }
   0xf   :  { %431 = shalt.err (!%p428_p7)
}
  0x10   :  { %s459_s22 = smov 64   ;;  %s460_s23 = smov 4  }
  0x11   :  { %25 = dma.hbm_to_vmem [thread:$0]  %s521_s2, 1408, %s20_s13, [#allocation3], %s459_s22, %s459_s22, %s460_s23  }
  0x12   :  { %454 = dma.done.wait [#allocation3], 1408  }
  0x13   :  { %455 = vsyncadd [#allocation3], 4294965888  ;;  %v461_v0 = vmov 0.0   ;;  %vm462_vm0 = vmmov 0   ;;  %vm61_vm1 = vcmask 1041408   ;;  %v32_v2 = vld [vmem:[%s520_s1] sm:$0xff]  ;;  %v158_v16 = vlaneseq }
  0x14   :  { %354 = vmatprep.subr.bf16.mxu1 %v461_v0  ;;  %356 = vmatprep.mubr.msk.bf16.mxu1 %vm462_vm0, %v461_v0  ;;  %v36_v1 = vld [vmem:[#allocation2 + $0x8] sm:$0x3]  ;;  %vm114_vm2 = vcmask 1045504   ;;  %v33_v4 = vpack.c.bf16 %v32_v2, %v32_v2  ;;  %v400_v5 = vld [vmem:[#allocation2] sm:$0x3f]   ;;  %vm57_vm3 = vcmask 31744  }
  0x15   :  { %366 = vmatprep.subr.bf16.mxu0 %v461_v0  ;;  %382 = vmatprep.mubr.msk.bf16.mxu0 %vm462_vm0, %v461_v0  ;;  %v63_v3 = vsel %vm61_vm1, %v36_v1, 0  ;;  %v401_v6 = vld [vmem:[#allocation2 + $0x10] sm:$0xff]   ;;  %v116_v7 = vsel %vm114_vm2, %v400_v5, 0  ;;  %v402_v8 = vld [vmem:[#allocation2 + $0x18] sm:$0xff]   ;;  %v30_v9 = vld [vmem:[%s519_s0] sm:$0xff]  ;;  %vm110_vm4 = vcmask 97280  }
  0x16   :  { %355 = vmatpush3.bf16.msra.mxu1 %v63_v3  ;;  %367 = vmatpush3.bf16.msra.mxu0 %v401_v6  ;;  %v403_v10 = vld [vmem:[#allocation2 + $0x20] sm:$0xff]   ;;  %v31_v11 = vpack.c.bf16 %v30_v9, %v30_v9  ;;  %v404_v12 = vld [vmem:[#allocation2 + $0x28] sm:$0xff]   ;;  %v405_v13 = vld [vmem:[#allocation2 + $0x30] sm:$0xff]   ;;  %v159_v19 = vshrl.u32 %v158_v16, 7  ;;  %v463_v39 = vmov 0   ;;  %s464_s0 = smov [#allocation5]  }
  0x17   :  { %360 = vmatprep.subr.bf16.mxu1 %v461_v0  ;;  %368 = vmatprep.subr.bf16.mxu0 %v461_v0  ;;  %v406_v14 = vld [vmem:[#allocation2 + $0x38] sm:$0xff]   ;;  %v407_v15 = vld [vmem:[#allocation2 + $0x40] sm:$0xff]   ;;  %v408_v17 = vld [vmem:[#allocation2 + $0x48] sm:$0xff]   ;;  %s318_s1 = sshll.u32 %s464_s0, 4  ;;  %vm310_vm5 = vcmask 57344   ;;  %s319_s1 = int_to_ptr.vmem [resolvable:$true] %s318_s1 }
  0x18   :  { %v53_v18 = vld [vmem:[#allocation2 + $0x50] sm:$0x1]  ;;  %v167_v21 = vsub.s32 1, %v159_v19  ;;  %v160_v27 = vsub.s32 0, %v159_v19  ;;  %v55_v37 = vld [vmem:[#allocation2 + $0x50] sm:$0x2]  ;;  %399 = vset.pattern.permute.xlu0 %v463_v39  ;;  %p437_p9 = scmp.lt.s32.totalorder %s319_s1, %s319_s1 }
  0x19   :  { %357 = vmatmul.mubr.msk.bf16.vlgmr.msra.gmra.mrb[0].mxu1 %vm57_vm3, %v33_v4  ;;  %v54_v20 = vunpack.c.l.bf16 %v53_v18  ;;  %v56_v38 = vunpack.c.l.bf16 %v55_v37  ;;  %v338_v47 = vcombine.low %v55_v37, %v55_v37  ;;  %s432_s29 = scalar_lea.vmem %s319_s1, 16  ;;  %s436_s30 = scalar_lea.vmem %s319_s1, 32 }
  0x1a   :  { %361 = vmatpush3.bf16.msra.mxu1 %v116_v7  ;;  %362 = vmatprep.mubr.msk.bf16.mxu1 %vm462_vm0, %v461_v0  ;;  %p433_p8 = scmp.ne.s32.totalorder %s319_s1, %s432_s29  ;;  %p438_p10 = scmp.lt.s32.totalorder %s436_s30, %s432_s29 }
  0x1b   :  { %386 = vmatprep.subr.bf16.mxu1 %v461_v0  ;;  %369 = vmatpush3.bf16.msra.mxu0 %v402_v8  ;;  %v168_v22 = vrot.slane %v54_v20, %v167_v21  ;;  %v161_v28 = vrot.slane %v54_v20, %v160_v27  ;;  %v266_v48 = vrot.slane %v338_v47, 1 }
  0x1c   :  { %370 = vmatprep.subr.bf16.mxu0 %v461_v0  ;;  %261 = vperm.xlu0 %399, %v56_v38   ;;  %p439_p11 = por %p438_p10, %p437_p9 }
  0x1e   :  { %p440_p12 = pnand %p439_p11, %p433_p8 }
  0x1f   :  { %371 = vmatpush3.bf16.msra.mxu0 %v403_v10 }
  0x20   :  { %372 = vmatprep.subr.bf16.mxu0 %v461_v0 }
  0x21   :  { %363 = vmatmul.mubr.msk.bf16.vlgmr.msra.gmra.mrb[4].mxu1 %vm110_vm4, %v31_v11 }
  0x22   :  { %388 = vmatprep.mubr.msk.bf16.mxu1 %vm462_vm0, %v461_v0 }
  0x23   :  { %373 = vmatpush3.bf16.msra.mxu0 %v404_v12 }
  0x24   :  { %374 = vmatprep.subr.bf16.mxu0 %v461_v0 }
  0x27   :  { %375 = vmatpush3.bf16.msra.mxu0 %v405_v13 }
  0x28   :  { %376 = vmatprep.subr.bf16.mxu0 %v461_v0 }
  0x2b   :  { %377 = vmatpush3.bf16.msra.mxu0 %v406_v14 }
  0x2c   :  { %378 = vmatprep.subr.bf16.mxu0 %v461_v0 }
  0x2f   :  { %379 = vmatpush3.bf16.msra.mxu0 %v407_v15 }
  0x30   :  { %380 = vmatprep.subr.bf16.mxu0 %v461_v0 }
  0x33   :  { %381 = vmatpush3.bf16.msra.mxu0 %v408_v17 }
  0x9b   :  { %v262_v49 = vpop.permute.xlu0 %261 }
  0x9c   :  { %v268_v50 = vrot.slane %v262_v49, 3 }
  0xec   :  { %v99_v23 = vpop.f32.mrb[0].mxu1 }
  0xed   :  { %v358_v24 = vpop.f32.mrb[1].mxu1 }
  0xee   :  { %v102_v25 = vpop.f32.mrb[2].mxu1 }
  0xef   :  { %v359_v26 = vpop.f32.mrb[3].mxu1 }
  0xf4   :  { %v152_v29 = vpop.f32.mrb[4].mxu1 }
  0xf5   :  { %v153_v30 = vadd.f32 %v152_v29, %v99_v23  ;;  %v364_v31 = vpop.f32.mrb[5].mxu1 }
  0xf6   :  { %v155_v32 = vpop.f32.mrb[6].mxu1 }
  0xf7   :  { %v162_v33 = vadd.f32 %v161_v28, %v153_v30  ;;  %v365_v34 = vpop.f32.mrb[7].mxu1 }
  0xf9   :  { %v163_v35 = vmax.f32 %v162_v33, 0.0 }
  0xfb   :  { %v164_v36 = vpack.c.bf16 %v163_v35, %v163_v35 }
  0xfd   :  { %383 = vmatmul.mubr.bf16.vlgmr.msra.gmra.mrb[0].mxu0 %v164_v36 }
 0x1d0   :  { %v251_v40 = vpop.f32.mrb[0].mxu0 }
 0x1d1   :  { %v252_v41 = vadd.f32 %v251_v40, %v168_v22  ;;  %v384_v42 = vpop.f32.mrb[1].mxu0 }
 0x1d2   :  { %v254_v43 = vpop.f32.mrb[2].mxu0 }
 0x1d3   :  { %v257_v44 = vmax.f32 %v252_v41, 0.0  ;;  %v385_v45 = vpop.f32.mrb[3].mxu0 }
 0x1d5   :  { %v258_v46 = vpack.c.bf16 %v257_v44, %v257_v44 }
 0x1d7   :  { %387 = vmatpush3.bf16.xpose.msra.mxu1 %v258_v46 }
 0x1de   :  { %389 = vmatmul.mubr.bf16.vlgmr.msra.gmra.mrb[8].mxu1 %v266_v48 }
 0x2b1   :  { %v304_v51 = vpop.f32.mrb[8].mxu1 }
 0x2b2   :  { %v305_v52 = vadd.f32 %v304_v51, %v268_v50  ;;  %v390_v53 = vpop.f32.mrb[9].mxu1 }
 0x2b3   :  { %v307_v54 = vpop.f32.mrb[10].mxu1 }
 0x2b4   :  { %v391_v55 = vpop.f32.mrb[11].mxu1  ;;  %311 = vst.msk [vmem:[#allocation5] sm:$0x1] %vm310_vm5, %v305_v52 }
 0x2b5   :  { %443 = shalt.err (!%p440_p12)
}
 0x2b6   :  { %s444_s6 = scalar_lea.hbm %s522_s3, 16 }
 0x2b7   :  { %p445_p13 = scmp.ne.s32.totalorder %s522_s3, %s444_s6  ;;  %p448_p0 = scmp.lt.u32.totalorder %s444_s6, %s522_s3 }
 0x2b9   :  { %p450_p1 = pnand %p448_p0, %p445_p13 }
 0x2bb   :  { %453 = shalt.err (!%p450_p1)
}
 0x2bc   :  { %321 = dma.vmem_to_hbm [thread:$0]  %s319_s1, 16, %s522_s3, [#allocation4]  }
 0x2bd   :  { %456 = dma.done.wait [#allocation4], 16  }
 0x2be   :  { %457 = vsyncadd [#allocation4], 4294967280 }
 0x2bf   :  { %325 = vsyncpa [#allocation3], 1 }
 0x2c0   :  { %326 = vsyncpa [#allocation4], 1 }

</bundles_post_ra>
